<compile_context>
chip_gen: v7x
topology: tpu7x:2x2x1
jax: 0.10.0
libtpu: 0.0.40
codegen_flags: <defaults>
</compile_context>

<pallas_src>
import jax
import jax.numpy as jnp
from jax.experimental import pallas as pl
from jax.experimental.pallas import tpu as pltpu


def _partial_logits_kernel(x_ref, w_ref, out_ref, acc_ref):
    """One (P, Kt) grid step: accumulate per-row partial dot products.

    x_ref:   (N, TK)   native-dtype tile of the flattened fake batch
    w_ref:   (1, TK)   matching tile of the discriminator weights
    out_ref: (1, N, 1) f32 partial logits for this P-slice (written once)
    acc_ref: (N, 1)    f32 running per-row accumulator (VMEM scratch)
    """
    k = pl.program_id(1)

    @pl.when(k == 0)
    def _init():
        acc_ref[...] = jnp.zeros_like(acc_ref)

    x = x_ref[...].astype(jnp.float32)            # per-tile upcast (bf16-friendly)
    w = w_ref[...].astype(jnp.float32)
    # Lane-dense VPU multiply + XLU lane reduction instead of an Nx1 MXU matmul.
    acc_ref[...] += jnp.sum(x * w, axis=-1, keepdims=True)

    @pl.when(k == pl.num_programs(1) - 1)
    def _finalize():
        out_ref[0] = acc_ref[...]


def _pick_tiling(n, d, itemsize, block_k=None):
    """Choose (TK, Kt, P): feature-tile width, reduction steps per slice, and
    number of 'parallel' slices of the feature axis."""
    if block_k is not None:
        tk = int(block_k)
        assert d % tk == 0 and (tk % 128 == 0 or tk == d), (d, tk)
    elif d % 128 != 0:
        # TODO(synk): ragged feature dims (D not a lane multiple) fall back to a
        # single un-tiled block instead of masked tiles.
        tk = d
    else:
        # ~2 MiB per x tile: big enough to sit on the HBM roofline, small enough
        # that double-buffered tiles stay far inside v7x's 64 MiB VMEM.
        target_bytes = 2 * 1024 * 1024
        tk = max(128, min(d, (target_bytes // max(1, n * itemsize)) // 128 * 128))
        while d % tk != 0:
            tk -= 128
    kt_total = d // tk
    p = 2 if (kt_total >= 2 and kt_total % 2 == 0) else 1
    return tk, kt_total // p, p


def generator_loss(real, fake, disc_w, disc_b, *, block_k=None):
    """real: (N,C,H,W) unused (as in GeneratorLoss.forward);
    fake: (N,C,H,W) any float dtype; disc_w: (C*H*W, 1); disc_b: scalar."""
    del real  # unused by GeneratorLoss.forward

    n = fake.shape[0]
    d = 1
    for s in fake.shape[1:]:
        d = d * s

    # Flatten like torch.flatten(fake, 1); keep the NATIVE dtype (no upcast here).
    x = fake.reshape(n, d)
    w = jnp.reshape(disc_w, (1, d))

    tk, kt, p = _pick_tiling(n, d, x.dtype.itemsize, block_k)

    tile_bytes = n * tk * x.dtype.itemsize + tk * w.dtype.itemsize
    vmem_limit_bytes = int(min(64 << 20, max(16 << 20, 8 * tile_bytes)))

    cost = pl.CostEstimate(
        flops=2 * n * d,
        transcendentals=0,
        bytes_accessed=int(n * d * x.dtype.itemsize
                           + d * w.dtype.itemsize
                           + p * n * 4),
    )

    partial_logits = pl.pallas_call(
        _partial_logits_kernel,
        out_shape=jax.ShapeDtypeStruct((p, n, 1), jnp.float32),
        grid_spec=pltpu.PrefetchScalarGridSpec(
            num_scalar_prefetch=0,
            grid=(p, kt),
            in_specs=[
                pl.BlockSpec((n, tk), lambda pi, ki: (0, pi * kt + ki)),
                pl.BlockSpec((1, tk), lambda pi, ki: (0, pi * kt + ki)),
            ],
            out_specs=pl.BlockSpec((1, n, 1), lambda pi, ki: (pi, 0, 0)),
            scratch_shapes=[pltpu.VMEM((n, 1), jnp.float32)],
        ),
        compiler_params=pltpu.CompilerParams(
            dimension_semantics=("parallel", "arbitrary"),
            vmem_limit_bytes=vmem_limit_bytes,
        ),
        cost_estimate=cost,
    )(x, w)

    # O(N) epilogue: combine the P parallel partials, add bias, then
    # BCEWithLogits(target=1) == softplus(-logit), numerically stable form.
    logits = jnp.sum(partial_logits, axis=0)[:, 0] + disc_b.astype(jnp.float32)
    per_row = (jnp.maximum(logits, 0.0) - logits
               + jnp.log1p(jnp.exp(-jnp.abs(logits))))
    return jnp.mean(per_row)


if __name__ == "__main__":
    key = jax.random.PRNGKey(0)
    k_real, k_fake, k_w, k_b = jax.random.split(key, 4)

    # Small NCHW shapes consistent with an image-GAN forward.
    N, C, H, W = 2, 4, 16, 16
    D = C * H * W

    real = jax.random.normal(k_real, (N, C, H, W), dtype=jnp.float32)
    fake = jax.random.normal(k_fake, (N, C, H, W), dtype=jnp.float32)

    # Deterministic synthetic linear discriminator (D -> 1 logit).
    disc_w = jax.random.normal(k_w, (D, 1), dtype=jnp.float32) * 0.02
    disc_b = jax.random.normal(k_b, (), dtype=jnp.float32) * 0.02

    # block_k=256 => grid=(P=2, Kt=2): exercises both the pipelined feature
    # tiling and the 2-way "parallel" core split even at this tiny size.
    loss = generator_loss(real, fake, disc_w, disc_b, block_k=256)
    jax.block_until_ready(loss)

    # Pure-JAX reference check.
    logits_ref = fake.reshape(N, D) @ disc_w + disc_b
    ref = jnp.mean(jnp.maximum(logits_ref, 0.0) - logits_ref
                   + jnp.log1p(jnp.exp(-jnp.abs(logits_ref))))
    assert jnp.allclose(loss, ref, atol=1e-5, rtol=1e-5), (loss, ref)

    print("KERNEL_OK")
</pallas_src>

<mosaic_0001>
module attributes {stable_mosaic.version = 11 : i64} {
  func.func @_partial_logits_kernel(%arg0: i32, %arg1: i32, %arg2: memref<2x256xf32, #tpu.memory_space<vmem>>, %arg3: memref<1x256xf32, #tpu.memory_space<vmem>>, %arg4: memref<1x2x1xf32, #tpu.memory_space<vmem>>, %arg5: memref<2x1xf32, #tpu.memory_space<vmem>>) attributes {dimension_semantics = [#tpu.dimension_semantics<parallel>, #tpu.dimension_semantics<arbitrary>], iteration_bounds = array<i64: 2, 2>, scalar_prefetch = 0 : i64, scratch_operands = 1 : i64, tpu.core_type = #tpu.core_type<tc>, window_params = [{transform_indices = @transform_0, window_bounds = array<i64: 2, 256>}, {transform_indices = @transform_1, window_bounds = array<i64: 1, 256>}, {transform_indices = @transform_2, window_bounds = array<i64: 1, 2, 1>}]} {
    %c0_i32 = arith.constant 0 : i32
    %0 = arith.cmpi eq, %arg1, %c0_i32 : i32
    %1 = arith.extui %0 : i1 to i32
    %c0_i32_0 = arith.constant 0 : i32
    %2 = arith.cmpi ne, %1, %c0_i32_0 : i32
    scf.if %2 {
      %cst_9 = arith.constant 0.000000e+00 : f32
      %15 = vector.broadcast %cst_9 : f32 to vector<2x1xf32>
      %c0_10 = arith.constant 0 : index
      %c0_11 = arith.constant 0 : index
      %16 = vector.load %arg5[%c0_10, %c0_11] : memref<2x1xf32, #tpu.memory_space<vmem>>, vector<2x1xf32>
      tpu.vector_store %arg5[%c0_10, %c0_11], %15 {strides = array<i32>} : memref<2x1xf32, #tpu.memory_space<vmem>>, vector<2x1xf32>,
    } else {
    }
    %c0 = arith.constant 0 : index
    %c0_1 = arith.constant 0 : index
    %3 = vector.load %arg2[%c0, %c0_1] : memref<2x256xf32, #tpu.memory_space<vmem>>, vector<2x256xf32>
    %c0_2 = arith.constant 0 : index
    %c0_3 = arith.constant 0 : index
    %4 = vector.load %arg3[%c0_2, %c0_3] : memref<1x256xf32, #tpu.memory_space<vmem>>, vector<1x256xf32>
    %c0_4 = arith.constant 0 : index
    %c0_5 = arith.constant 0 : index
    %5 = vector.load %arg5[%c0_4, %c0_5] : memref<2x1xf32, #tpu.memory_space<vmem>>, vector<2x1xf32>
    %6 = vector.broadcast %4 : vector<1x256xf32> to vector<2x256xf32>
    %7 = arith.mulf %3, %6 : vector<2x256xf32>
    %cst = arith.constant dense<0.000000e+00> : vector<2xf32>
    %8 = vector.multi_reduction <add>, %7, %cst [1] : vector<2x256xf32> to vector<2xf32>
    %9 = vector.shape_cast %8 : vector<2xf32> to vector<2x1xf32>
    %10 = arith.addf %5, %9 : vector<2x1xf32>
    %c0_6 = arith.constant 0 : index
    %c0_7 = arith.constant 0 : index
    %11 = vector.load %arg5[%c0_6, %c0_7] : memref<2x1xf32, #tpu.memory_space<vmem>>, vector<2x1xf32>
    tpu.vector_store %arg5[%c0_6, %c0_7], %10 {strides = array<i32>} : memref<2x1xf32, #tpu.memory_space<vmem>>, vector<2x1xf32>,
    %c1_i32 = arith.constant 1 : i32
    %12 = arith.cmpi eq, %arg1, %c1_i32 : i32
    %13 = arith.extui %12 : i1 to i32
    %c0_i32_8 = arith.constant 0 : i32
    %14 = arith.cmpi ne, %13, %c0_i32_8 : i32
    scf.if %14 {
      %c0_9 = arith.constant 0 : index
      %c0_10 = arith.constant 0 : index
      %15 = vector.load %arg5[%c0_9, %c0_10] : memref<2x1xf32, #tpu.memory_space<vmem>>, vector<2x1xf32>
      %c0_11 = arith.constant 0 : index
      %c0_12 = arith.constant 0 : index
      %c0_13 = arith.constant 0 : index
      %16 = vector.load %arg4[%c0_11, %c0_12, %c0_13] : memref<1x2x1xf32, #tpu.memory_space<vmem>>, vector<1x2x1xf32>
      %17 = vector.shape_cast %16 : vector<1x2x1xf32> to vector<2x1xf32>
      %18 = vector.shape_cast %15 : vector<2x1xf32> to vector<1x2x1xf32>
      tpu.vector_store %arg4[%c0_11, %c0_12, %c0_13], %18 {strides = array<i32>} : memref<1x2x1xf32, #tpu.memory_space<vmem>>, vector<1x2x1xf32>,
    } else {
    }
    return
  }
  func.func @transform_0(%arg0: i32, %arg1: i32) -> (i32, i32) {
    %c2_i32 = arith.constant 2 : i32
    %0 = arith.muli %arg0, %c2_i32 : i32
    %1 = arith.addi %0, %arg1 : i32
    %c0_i32 = arith.constant 0 : i32
    %c0_i32_0 = arith.constant 0 : i32
    return %c0_i32, %1 : i32, i32
  }
  func.func @transform_1(%arg0: i32, %arg1: i32) -> (i32, i32) {
    %c2_i32 = arith.constant 2 : i32
    %0 = arith.muli %arg0, %c2_i32 : i32
    %1 = arith.addi %0, %arg1 : i32
    %c0_i32 = arith.constant 0 : i32
    %c0_i32_0 = arith.constant 0 : i32
    return %c0_i32, %1 : i32, i32
  }
  func.func @transform_2(%arg0: i32, %arg1: i32) -> (i32, i32, i32) {
    %c0_i32 = arith.constant 0 : i32
    %c0_i32_0 = arith.constant 0 : i32
    %c0_i32_1 = arith.constant 0 : i32
    return %arg0, %c0_i32, %c0_i32_0 : i32, i32, i32
  }
}

</mosaic_0001>

<bundles_post_ra>
// kernel: tpu_custom_call.1
= control target key start
LH: loop header
LB: loop body
LE: loop exit
PB: predicated region body
PF: predicated region fallthrough
CT: control target
= control target key end

     0   :  { %7 = vsyncpa [#allocation4], 0  ;;  %s836_s0 = inlined_call_operand.hbm [shape: f32[2,1024], index: 0, kind: input, shape index: {}]   ;;  %s837_s1 = inlined_call_operand.hbm [shape: f32[1,1024], index: 1, kind: input, shape index: {}]   ;;  %s838_s2 = inlined_call_operand.vmem [shape: f32[2,2,1], index: 2, kind: output, shape index: {}]  }
   0x1   :  { %9 = vsyncpa [#allocation4 + $0x1], 0 }
   0x2   :  { %10 = vsyncpa [#allocation6], 0 }
   0x3   :  { %12 = vsyncpa [#allocation6 + $0x1], 0  ;;  %s640_s9 = smov 0   ;;  %s642_s10 = smov 0  }
   0x4   :  { %s644_s11 = smov 0   ;;  %s646_s12 = smov 0  }
   0x5   :  { %s648_s13 = smov 0   ;;  %s650_s14 = smov 0  }
   0x6   :  { %s652_s15 = smov 0   ;;  %s654_s16 = smov 0  }
   0x7 LB: > { %s385_s17 = sadd.s32 4294967295, %s619_s16   ;;  %s27_s18 = sadd.s32 1, %s611_s14  ;;  %s619_s16 = sphi %s654_s16, %s18_s16   ;;  %s615_s15 = sphi %s652_s15, %s854_s15   ;;  %s611_s14 = sphi %s650_s14, %s853_s14   ;;  %s607_s13 = sphi %s648_s13, %s852_s13   ;;  %s603_s12 = sphi %s646_s12, %s851_s12   ;;  %s599_s11 = sphi %s644_s11, %s850_s11   ;;  %s595_s10 = sphi %s642_s10, %s849_s10   ;;  %s591_s9 = sphi %s640_s9, %s848_s9  }
   0x8   : > { %p28_p0 = scmp.ge.s32.totalorder %s27_s18, 2  ;;  %s30_s19 = sadd.s32 1, %s615_s15 }
   0x9   : > { %s387_s20 = sshll.u32 %s615_s15, 1  ;;  %s41_s21 = sadd.s32 1, %s599_s11 }
   0xa   : > { %s856_s18 = smov (%p28_p0, %s27_s18), 0  ;;  %s858_s19 = smov (!%p28_p0, %s30_s19), %s615_s15 }
   0xb   : > { %s687_s22 = sadd.s32 %s611_s14, %s387_s20  ;;  %p48_p1 = scmp.ne.s32.totalorder %s599_s11, %s595_s10 }
   0xc   : > { %p32_p2 = scmp.ge.s32.totalorder %s858_s19, 2  ;;  %p49_p3 = scmp.eq.s32.totalorder %s619_s16, 0 }
   0xd   : > { %p54_p4 = scmp.ne.s32.totalorder %s595_s10, %s591_s9  ;;  %p55_p5 = scmp.eq.s32.totalorder %s385_s17, 0 }
   0xe   : > { %s860_s19 = smov (%p32_p2, %s858_s19), 0  ;;  %p695_p6 = por %p49_p3, %p48_p1 }
   0xf   : > { %p699_p7 = por %p55_p5, %p54_p4  ;;  %s388_s25 = sshll.u32 %s860_s19, 1 }
  0x10   : > { %s37_s26 = sadd.s32 %s388_s25, %s856_s18  ;;  %p422_p8 = scmp.lt.s32.totalorder %s619_s16, 4 }
  0x11   : > { %s841_s24 = scalar_select %p699_p7, 1, 0 }
  0x12   : > { %s38_s27 = ssub.s32 %s687_s22, %s37_s26  ;;  %s708_s28 = sand.u32 1, %s599_s11  }
  0x13   : > { %p39_p9 = scmp.eq.s32.totalorder %s38_s27, 0  ;;  %s393_s29 = sshll.u32 %s708_s28, 2 }
  0x14   : > { %s409_s30 = sshll.u32 %s687_s22, 6  ;;  %s138_s7 = scalar_lea.vmem [#allocation3], %s393_s29 }
  0x15   : > { %s713_s3 = scalar_select %p39_p9, %s599_s11, %s41_s21  }
  0x16   : > { %s718_s6 = scalar_lea.hbm %s836_s0, %s409_s30  ;;  %s148_s8 = sshll.u32 %s138_s7, 4  ;;  %s726_s8 = int_to_ptr.vmem [resolvable:$true] %s148_s8 }
  0x17   : > { %p722_p10 = pnand %p422_p8, %p695_p6  ;;  %s135_s17 = scalar_lea.sflag [#allocation4], %s708_s28 }
  0x18   : > { %s489_s20 = scalar_lea.hbm %s718_s6, 64  ;;  %s494_s25 = scalar_lea.hbm %s836_s0, 256 }
  0x19   : > { %p490_p13 = scmp.ne.s32.totalorder %s718_s6, %s489_s20  ;;  %p491_p0 = pneg %p722_p10 }
  0x1a   : > { %p495_p3 = scmp.lt.u32.totalorder %s718_s6, %s836_s0  ;;  %p496_p4 = scmp.lt.u32.totalorder %s494_s25, %s489_s20 }
  0x1b   : > { %p492_p1 = pnand %p491_p0, %p490_p13  ;;  %p498_p6 = scmp.lt.u32.totalorder %s489_s20, %s718_s6 }
  0x1c   : > { %p497_p5 = por %p496_p4, %p495_p3 }
  0x1d   : > { %p493_p2 = pneg %p492_p1 }
  0x1e   : > { %p499_p8 = por %p498_p6, %p497_p5 }
  0x20   : > { %p500_p9 = pnand %p499_p8, %p493_p2 }
  0x22   : > { %503 = shalt.err (!%p500_p9)
}
  0x23   : > { %s504_s29 = scalar_lea.vmem %s726_s8, 64  ;;  %s621_s30 = smov [#allocation3]  }
  0x24   : > { %p505_p13 = scmp.ne.s32.totalorder %s726_s8, %s504_s29  ;;  %s509_s4 = sshll.u32 %s621_s30, 4  ;;  %s510_s4 = int_to_ptr.vmem [resolvable:$false] %s509_s4 }
  0x25   : > { %s511_s5 = scalar_lea.vmem %s510_s4, 128  ;;  %p512_p12 = scmp.lt.s32.totalorder %s726_s8, %s510_s4 }
  0x26   : > { %p507_p1 = pnand %p505_p13, %p491_p0  ;;  %p513_p3 = scmp.lt.s32.totalorder %s511_s5, %s504_s29 }
  0x28   : > { %p508_p11 = pneg %p507_p1  ;;  %p514_p4 = por %p513_p3, %p512_p12 }
  0x2a   : > { %p515_p5 = pnand %p514_p4, %p508_p11 }
  0x2c   : > { %518 = shalt.err (!%p515_p5)
}
  0x2d   : > { %418 = dma.hbm_to_vmem [thread:$0]  (!%p722_p10), %s718_s6, 64, %s726_s8, %s135_s17  }
  0x2e   : > { %p843_p2 = scmp.lt.s32.totalorder %s619_s16, 5  ;;  %p844_p6 = scmp.ge.s32.totalorder %s619_s16, 1 }
  0x2f   : > { %s397_s20 = sshll.u32 %s708_s28, 1  ;;  %s410_s21 = sshll.u32 %s687_s22, 5 }
  0x30   : > { %p760_p8 = pnand %p844_p6, %p843_p2  ;;  %s769_s26 = scalar_lea.hbm %s837_s1, %s410_s21 }
  0x31   : > { %s159_s27 = scalar_lea.vmem [#allocation5], %s397_s20  ;;  %s156_s6 = scalar_lea.sflag [#allocation6], %s708_s28 }
  0x32   : > { %s845_s7 = scalar_select %p760_p8, 1, 0 }
  0x33   : > { %s169_s29 = sshll.u32 %s159_s27, 4  ;;  %s519_s8 = scalar_lea.hbm %s769_s26, 32  ;;  %s170_s29 = int_to_ptr.vmem [resolvable:$true] %s169_s29 }
  0x34   : > { %p520_p11 = scmp.ne.s32.totalorder %s769_s26, %s519_s8  ;;  %s524_s30 = scalar_lea.hbm %s837_s1, 128 }
  0x35   : > { %p525_p13 = scmp.lt.u32.totalorder %s769_s26, %s837_s1  ;;  %p526_p1 = scmp.lt.u32.totalorder %s524_s30, %s519_s8 }
  0x36   : > { %p522_p12 = pnand %p520_p11, %p491_p0  ;;  %p528_p4 = scmp.lt.u32.totalorder %s519_s8, %s769_s26 }
  0x37   : > { %p527_p3 = por %p526_p1, %p525_p13 }
  0x38   : > { %p523_p9 = pneg %p522_p12 }
  0x39   : > { %p529_p5 = por %p528_p4, %p527_p3 }
  0x3b   : > { %p530_p2 = pnand %p529_p5, %p523_p9 }
  0x3d   : > { %533 = shalt.err (!%p530_p2)
}
  0x3e   : > { %s534_s28 = scalar_lea.vmem %s170_s29, 32  ;;  %s622_s20 = smov [#allocation5]  }
  0x3f   : > { %p535_p6 = scmp.ne.s32.totalorder %s170_s29, %s534_s28  ;;  %s539_s21 = sshll.u32 %s622_s20, 4  ;;  %s540_s21 = int_to_ptr.vmem [resolvable:$false] %s539_s21 }
  0x40   : > { %s541_s23 = scalar_lea.vmem %s540_s21, 64  ;;  %p542_p7 = scmp.lt.s32.totalorder %s170_s29, %s540_s21 }
  0x41   : > { %p537_p11 = pnand %p535_p6, %p491_p0  ;;  %p543_p8 = scmp.lt.s32.totalorder %s541_s23, %s534_s28 }
  0x43   : > { %p538_p12 = pneg %p537_p11  ;;  %p544_p1 = por %p543_p8, %p542_p7 }
  0x45   : > { %p545_p13 = pnand %p544_p1, %p538_p12 }
  0x47   : > { %548 = shalt.err (!%p545_p13)
}
  0x48   : > { %421 = dma.hbm_to_vmem [thread:$0]  (!%p722_p10), %s769_s26, 32, %s170_s29, %s156_s6  }
  0x49   : > { %p846_p9 = scmp.ne.s32.totalorder %s845_s7, 0 }
  0x4a   : > { %s180_s25 = sand.u32 (!%p846_p9), 1, %s595_s10   ;;  %p847_p0 = scmp.ne.s32.totalorder (!%p846_p9), %s841_s24, 0 }
  0x4b   : > { %178 = sbr.rel (%p846_p9) target bundleno = 269 (0x10d), region = 28  ;;  %s402_s27 = sshll.u32 (!%p846_p9), %s180_s25, 2 }
  0x4c   : > { %s181_s8 = scalar_lea.sflag (!%p846_p9), [#allocation4], %s180_s25  ;;  %s184_s22 = scalar_lea.vmem (!%p846_p9), [#allocation3], %s402_s27 }
  0x52   : > { %582 = dma.done.wait (%p847_p0), %s181_s8, 64  }
  0x53   : > { %584 = vsyncadd (%p847_p0), %s181_s8, 4294967232  ;;  %s403_s17 = sshll.u32 %s180_s25, 1  ;;  %s190_s30 = scalar_lea.sflag [#allocation6], %s180_s25 }
  0x54   : > { %s193_s9 = scalar_lea.vmem [#allocation5], %s403_s17 }
  0x55   : > { %586 = dma.done.wait (%p847_p0), %s190_s30, 32  }
  0x56   : > { %588 = vsyncadd (%p847_p0), %s190_s30, 4294967264  ;;  %p224_p7 = scmp.lt.s32.totalorder %s607_s13, 1  ;;  %p405_p10 = scmp.ne.s32.totalorder %s603_s12, 0 }
  0x57   : > { %vm232_vm0 = vcmask (!%p405_p10), 1024   ;;  %v623_v0 = vmov (!%p405_p10), 0.0  }
  0x58   : > { %s862_s13 = smov (!%p224_p7, %s607_s13), 1  ;;  %231 = sbr.rel (%p405_p10) target bundleno = 95 (0x5f), region = 40 }
  0x59   : > { %s404_s7 = sshll.u32 %s862_s13, 1  ;;  %233 = vst.msk [vmem:[#allocation2] sm:$0x3] (!%p405_p10), %vm232_vm0, %v623_v0 }
  0x5a   : > { %s807_s6 = scalar_lea.vmem %s838_s2, %s404_s7 }
  0x5f PF: > { %v238_v1 = vlaneseq  ;;  %v624_v2 = vmov 1983009808   ;;  %v235_v5 = vld [vmem:[%s193_s9] sm:$0x3]  ;;  %v234_v13 = vld [vmem:[%s184_s22] sm:$0xf] }
  0x60   : > { %v248_v3 = vunpack.c.l.s4 %v624_v2  ;;  %vm267_vm1 = vcmask 1041408   ;;  %v236_v21 = vld [vmem:[#allocation2] sm:$0x3]  ;;  %vm274_vm2 = vcmask 1024   ;;  %p406_p8 = scmp.ne.s32.totalorder %s603_s12, 1 }
  0x61   : > { %v239_v4 = vshrl.u32 %v238_v1, 7 }
  0x62   : > { %v249_v6 = vunpack.c.0.s8 %v248_v3 }
  0x63   : > { %v240_v7 = vsub.s32 0, %v239_v4  ;;  %v244_v8 = vsub.s32 1, %v239_v4 }
  0x64   : > { %v252_v11 = vsub.s32 %v249_v6, %v239_v4 }
  0x65   : > { %v241_v9 = vrot.slane %v235_v5, %v240_v7  ;;  %v245_v10 = vrot.slane %v235_v5, %v244_v8 }
  0x67   : > { %v246_v12 = vcombine.low %v241_v9, %v245_v10 }
  0x69   : > { %v253_v14 = vrot.slane %v246_v12, %v252_v11 }
  0x6b   : > { %v255_v15 = vmul.f32 %v253_v14, %v234_v13 }
  0x6d   : > { %v263_v16 = vrot.slane %v255_v15, %v252_v11 }
  0x6f   : > { %v264_v17 = vcombine.high %v263_v16, %v263_v16  ;;  %v268_v18 = vsel %vm267_vm1, %v263_v16, 0.0 }
  0x71   : > { %v269_v19 = vsel %vm267_vm1, %v264_v17, 0.0 }
  0x72   : > { %v270_v20 = vadd.f32 %v269_v19, %v268_v18 }
  0x74   : > { %271 = vadd.xlane.f32.xlu0 %v270_v20 }
  0xfe   : > { %279 = sbr.rel (%p406_p8) target bundleno = 269 (0x10d), region = 44 }
 0x101   : > { %v272_v22 = vpop.xlane.xlu0 %271 }
 0x102   : > { %v273_v23 = vadd.f32 %v272_v22, %v236_v21 }
 0x104   : > { %275 = vst.msk [vmem:[#allocation2] sm:$0x3] %vm274_vm2, %v273_v23 }
 0x10b   : > { %v280_v24 = vld [vmem:[#allocation2] sm:$0x3] }
 0x10c   : > { %281 = vst.msk [vmem:[%s807_s6] sm:$0x3] %vm274_vm2, %v280_v24 }
 0x10d PF: > { %s18_s16 = sadd.s32 1, %s619_s16   ;;  %s848_s9 = smov %s595_s10 }
 0x10e   : > { %p15_p3 = scmp.ge.s32.totalorder %s18_s16, 6   ;;  %s849_s10 = smov %s599_s11 }
 0x10f   : > { %s850_s11 = smov %s713_s3  ;;  %s851_s12 = smov %s611_s14 }
 0x110   : > { %s852_s13 = smov %s615_s15  ;;  %s853_s14 = smov %s856_s18 }
 0x111   : > { %s854_s15 = smov %s860_s19  ;;  %17 = sbr.rel (!%p15_p3) target bundleno = 7 (0x7), region = 89 }
 0x118   :  { %301 = vsyncpa [#allocation4], 1 }
 0x119   :  { %303 = vsyncpa [#allocation4 + $0x1], 1 }
 0x11a   :  { %304 = vsyncpa [#allocation6], 1 }
 0x11b   :  { %306 = vsyncpa [#allocation6 + $0x1], 1 }

</bundles_post_ra>
